<compile_context>
chip_gen: v7x
topology: tpu7x:2x2x1
jax: 0.10.0
libtpu: 0.0.40
codegen_flags: <defaults>
</compile_context>

<pallas_src>
import jax
import jax.numpy as jnp
from jax.experimental import pallas as pl
from jax.experimental.pallas import tpu as pltpu

# ----------------------- synthetic "cfg" (small shapes) -----------------------
BATCH = 2
C_IN = 4
OUT_H, OUT_W = 8, 8          # cfg.output_shape
DEPTH_DIM = 8                # cfg.depth_dim
JOINT_NUM = 3
C_OUT = JOINT_NUM * DEPTH_DIM
HW = OUT_H * OUT_W
L = DEPTH_DIM * HW           # softmax length = D*H*W = 512
BJ = BATCH * JOINT_NUM

assert OUT_W & (OUT_W - 1) == 0, "in-kernel iota decode assumes OUT_W is a power of 2"
SHIFT_W = OUT_W.bit_length() - 1          # log2(OUT_W)


# ------------------------------- fused kernel ---------------------------------
def fused_kernel(x_ref, w_ref, o_ref):
    """Backbone 1x1 conv + soft_argmax, whole batch, everything in vregs.

    x_ref : (C_IN+1, B*HW) f32  input channels, columns ordered (b, hw); last row = 1
    w_ref : (C_OUT, C_IN+1) f32 conv weight with the bias folded in as the last column
    o_ref : (B*J, 1, 3)     f32 output coordinates (x, y, z), row bj = b*J + j
    """
    x = x_ref[...]                                   # (5, 128)
    w = w_ref[...]                                   # (24, 5)

    # ---- backbone 1x1 conv on the VPU: K=C_IN+1 rank-1 updates (bias folded) ----
    fm = w[:, 0:1] * x[0:1, :]                       # (C_OUT, B*HW) = (24, 128)
    for c in range(1, C_IN + 1):
        fm = fm + w[:, c:c + 1] * x[c:c + 1, :]
    # fm[row = j*D + d, col = b*HW + hw]

    # ---- regroup to (BJ, D, HW) with static slices (stays in vregs) ----
    fm6 = jnp.stack(
        [fm[j * DEPTH_DIM:(j + 1) * DEPTH_DIM, b * HW:(b + 1) * HW]
         for b in range(BATCH) for j in range(JOINT_NUM)],
        axis=0)                                      # (BJ, D, HW) = (6, 8, 64)

    # ---- soft_argmax: softmax over (D, HW); marginals computed once ----
    m = jnp.max(jnp.max(fm6, axis=2, keepdims=True), axis=1, keepdims=True)  # (BJ,1,1)
    e = jnp.exp(fm6 - m)                             # unnormalized softmax
    p_hw = jnp.sum(e, axis=1, keepdims=True)         # (BJ,1,HW)  marginal over depth
    p_d = jnp.sum(e, axis=2, keepdims=True)          # (BJ,D,1)   marginal over space
    s = jnp.sum(p_hw, axis=2, keepdims=True)         # (BJ,1,1)   softmax denominator

    # coordinate weights generated in-kernel (no extra DMAs); H, W are powers of 2
    hw_idx = jax.lax.broadcasted_iota(jnp.int32, (1, 1, HW), 2)
    wx = ((hw_idx & (OUT_W - 1)) + 1).astype(jnp.float32)    # (1,1,HW): column + 1
    wy = ((hw_idx >> SHIFT_W) + 1).astype(jnp.float32)       # (1,1,HW): row + 1
    d_idx = jax.lax.broadcasted_iota(jnp.int32, (1, DEPTH_DIM, 1), 1)
    wz = (d_idx + 1).astype(jnp.float32)                     # (1,D,1):  depth + 1

    cx = jnp.sum(p_hw * wx, axis=2, keepdims=True)   # (BJ,1,1)
    cy = jnp.sum(p_hw * wy, axis=2, keepdims=True)   # (BJ,1,1)
    cz = jnp.sum(p_d * wz, axis=1, keepdims=True)    # (BJ,1,1)

    inv_s = pl.reciprocal(s, approx=False)           # exact; approx=True risks rtol=1e-4
    o_ref[...] = jnp.concatenate([cx, cy, cz], axis=2) * inv_s - 1.0   # one store


# ------------------------------ host-side helpers ------------------------------
def init_params(key):
    kw, kb = jax.random.split(key)
    # PyTorch 1x1-conv layout: (C_OUT, C_IN); bias (C_OUT, 1)
    w = jax.random.normal(kw, (C_OUT, C_IN), jnp.float32) * 0.1
    b = jax.random.normal(kb, (C_OUT, 1), jnp.float32) * 0.01
    return {"w": w, "b": b}


def custom_net_forward(input_img, params, target=None):
    # input_img is NCHW (B, C_in, H, W), exactly like the PyTorch module.
    B, C, H, W = input_img.shape
    # Lane-dense packing: (C_IN, B*HW); append a ones row so the bias folds into w.
    x = input_img.reshape(B, C, H * W).transpose(1, 0, 2).reshape(C, B * H * W)
    x_aug = jnp.concatenate([x, jnp.ones((1, B * H * W), x.dtype)], axis=0)  # (C_IN+1, 128)
    w_aug = jnp.concatenate([params["w"], params["b"]], axis=1)              # (C_OUT, C_IN+1)

    coord = pl.pallas_call(
        fused_kernel,
        out_shape=jax.ShapeDtypeStruct((B * JOINT_NUM, 1, 3), jnp.float32),
        grid=(1,),                                     # whole problem in one step
        in_specs=[
            pl.BlockSpec((C_IN + 1, B * H * W), lambda i: (0, 0)),
            pl.BlockSpec((C_OUT, C_IN + 1), lambda i: (0, 0)),
        ],
        out_specs=pl.BlockSpec((B * JOINT_NUM, 1, 3), lambda i: (0, 0, 0)),
        compiler_params=pltpu.CompilerParams(dimension_semantics=("arbitrary",)),
    )(x_aug, w_aug)

    coord = coord.reshape(B, JOINT_NUM, 3)             # free reshape on host
    if target is None:
        return coord
    # training branch: simple elementwise loss (kept in plain JAX glue)
    loss_coord = jnp.abs(coord - target["coord"]) * target["vis"]
    loss_coord = (loss_coord[:, :, 0] + loss_coord[:, :, 1] +
                  loss_coord[:, :, 2] * target["have_depth"]) / 3.0
    return loss_coord


# ------------------------------ reference (pure JAX) ----------------------------
def make_ref_coord_weights():
    d_idx, h_idx, w_idx = jnp.meshgrid(
        jnp.arange(DEPTH_DIM), jnp.arange(OUT_H), jnp.arange(OUT_W), indexing="ij")
    wx = (w_idx + 1).reshape(-1).astype(jnp.float32)
    wy = (h_idx + 1).reshape(-1).astype(jnp.float32)
    wz = (d_idx + 1).reshape(-1).astype(jnp.float32)
    return jnp.stack([wx, wy, wz], axis=0)                  # (3, L)


def reference_forward(input_img, params, coord_weights):
    B, C, H, W = input_img.shape
    x = input_img.reshape(B, C, H * W)                      # (B, C_IN, HW)
    fm = jnp.einsum("oc,bcs->bos", params["w"], x) + params["b"][None]   # (B, C_OUT, HW)
    fm = fm.reshape(B, JOINT_NUM, L)                        # flat idx = d*H*W + h*W + w
    p = jax.nn.softmax(fm, axis=2)
    return jnp.einsum("bjl,cl->bjc", p, coord_weights) - 1.0


# ----------------------------------- main ---------------------------------------
if __name__ == "__main__":
    key = jax.random.PRNGKey(0)
    k_img, k_params = jax.random.split(key)

    input_img = jax.random.normal(k_img, (BATCH, C_IN, OUT_H, OUT_W), jnp.float32)
    params = init_params(k_params)

    fwd = jax.jit(custom_net_forward)
    coord = jax.block_until_ready(fwd(input_img, params))

    ref = reference_forward(input_img, params, make_ref_coord_weights())
    assert coord.shape == (BATCH, JOINT_NUM, 3)
    assert jnp.allclose(coord, ref, rtol=1e-4, atol=1e-4), "mismatch vs JAX reference"

    print("KERNEL_OK")
</pallas_src>

<mosaic_0001>
module attributes {stable_mosaic.version = 11 : i64} {
  func.func @fused_kernel(%arg0: i32, %arg1: memref<5x128xf32, #tpu.memory_space<vmem>>, %arg2: memref<24x5xf32, #tpu.memory_space<vmem>>, %arg3: memref<6x1x3xf32, #tpu.memory_space<vmem>>) attributes {dimension_semantics = [#tpu.dimension_semantics<arbitrary>], iteration_bounds = array<i64: 1>, scalar_prefetch = 0 : i64, scratch_operands = 0 : i64, tpu.core_type = #tpu.core_type<tc>, window_params = [{pipeline_mode = #tpu.pipeline_mode<synchronous>, transform_indices = @transform_0, window_bounds = array<i64: 5, 128>}, {pipeline_mode = #tpu.pipeline_mode<synchronous>, transform_indices = @transform_1, window_bounds = array<i64: 24, 5>}, {pipeline_mode = #tpu.pipeline_mode<synchronous>, transform_indices = @transform_2, window_bounds = array<i64: 6, 1, 3>}]} {
    %c0 = arith.constant 0 : index
    %c0_0 = arith.constant 0 : index
    %0 = vector.load %arg1[%c0, %c0_0] : memref<5x128xf32, #tpu.memory_space<vmem>>, vector<5x128xf32>
    %c0_1 = arith.constant 0 : index
    %c0_2 = arith.constant 0 : index
    %1 = vector.load %arg2[%c0_1, %c0_2] : memref<24x5xf32, #tpu.memory_space<vmem>>, vector<24x5xf32>
    %2 = vector.extract_strided_slice %1 {offsets = [0, 0], sizes = [24, 1], strides = [1, 1]} : vector<24x5xf32> to vector<24x1xf32>
    %3 = vector.extract_strided_slice %0 {offsets = [0, 0], sizes = [1, 128], strides = [1, 1]} : vector<5x128xf32> to vector<1x128xf32>
    %4 = vector.broadcast %2 : vector<24x1xf32> to vector<24x128xf32>
    %5 = vector.broadcast %3 : vector<1x128xf32> to vector<24x128xf32>
    %6 = arith.mulf %4, %5 : vector<24x128xf32>
    %7 = vector.extract_strided_slice %1 {offsets = [0, 1], sizes = [24, 1], strides = [1, 1]} : vector<24x5xf32> to vector<24x1xf32>
    %8 = vector.extract_strided_slice %0 {offsets = [1, 0], sizes = [1, 128], strides = [1, 1]} : vector<5x128xf32> to vector<1x128xf32>
    %9 = vector.broadcast %7 : vector<24x1xf32> to vector<24x128xf32>
    %10 = vector.broadcast %8 : vector<1x128xf32> to vector<24x128xf32>
    %11 = arith.mulf %9, %10 : vector<24x128xf32>
    %12 = arith.addf %6, %11 : vector<24x128xf32>
    %13 = vector.extract_strided_slice %1 {offsets = [0, 2], sizes = [24, 1], strides = [1, 1]} : vector<24x5xf32> to vector<24x1xf32>
    %14 = vector.extract_strided_slice %0 {offsets = [2, 0], sizes = [1, 128], strides = [1, 1]} : vector<5x128xf32> to vector<1x128xf32>
    %15 = vector.broadcast %13 : vector<24x1xf32> to vector<24x128xf32>
    %16 = vector.broadcast %14 : vector<1x128xf32> to vector<24x128xf32>
    %17 = arith.mulf %15, %16 : vector<24x128xf32>
    %18 = arith.addf %12, %17 : vector<24x128xf32>
    %19 = vector.extract_strided_slice %1 {offsets = [0, 3], sizes = [24, 1], strides = [1, 1]} : vector<24x5xf32> to vector<24x1xf32>
    %20 = vector.extract_strided_slice %0 {offsets = [3, 0], sizes = [1, 128], strides = [1, 1]} : vector<5x128xf32> to vector<1x128xf32>
    %21 = vector.broadcast %19 : vector<24x1xf32> to vector<24x128xf32>
    %22 = vector.broadcast %20 : vector<1x128xf32> to vector<24x128xf32>
    %23 = arith.mulf %21, %22 : vector<24x128xf32>
    %24 = arith.addf %18, %23 : vector<24x128xf32>
    %25 = vector.extract_strided_slice %1 {offsets = [0, 4], sizes = [24, 1], strides = [1, 1]} : vector<24x5xf32> to vector<24x1xf32>
    %26 = vector.extract_strided_slice %0 {offsets = [4, 0], sizes = [1, 128], strides = [1, 1]} : vector<5x128xf32> to vector<1x128xf32>
    %27 = vector.broadcast %25 : vector<24x1xf32> to vector<24x128xf32>
    %28 = vector.broadcast %26 : vector<1x128xf32> to vector<24x128xf32>
    %29 = arith.mulf %27, %28 : vector<24x128xf32>
    %30 = arith.addf %24, %29 : vector<24x128xf32>
    %31 = vector.extract_strided_slice %30 {offsets = [0, 0], sizes = [8, 64], strides = [1, 1]} : vector<24x128xf32> to vector<8x64xf32>
    %32 = vector.extract_strided_slice %30 {offsets = [8, 0], sizes = [8, 64], strides = [1, 1]} : vector<24x128xf32> to vector<8x64xf32>
    %33 = vector.extract_strided_slice %30 {offsets = [16, 0], sizes = [8, 64], strides = [1, 1]} : vector<24x128xf32> to vector<8x64xf32>
    %34 = vector.extract_strided_slice %30 {offsets = [0, 64], sizes = [8, 64], strides = [1, 1]} : vector<24x128xf32> to vector<8x64xf32>
    %35 = vector.extract_strided_slice %30 {offsets = [8, 64], sizes = [8, 64], strides = [1, 1]} : vector<24x128xf32> to vector<8x64xf32>
    %36 = vector.extract_strided_slice %30 {offsets = [16, 64], sizes = [8, 64], strides = [1, 1]} : vector<24x128xf32> to vector<8x64xf32>
    %37 = vector.shape_cast %31 : vector<8x64xf32> to vector<1x8x64xf32>
    %38 = vector.shape_cast %32 : vector<8x64xf32> to vector<1x8x64xf32>
    %39 = vector.shape_cast %33 : vector<8x64xf32> to vector<1x8x64xf32>
    %40 = vector.shape_cast %34 : vector<8x64xf32> to vector<1x8x64xf32>
    %41 = vector.shape_cast %35 : vector<8x64xf32> to vector<1x8x64xf32>
    %42 = vector.shape_cast %36 : vector<8x64xf32> to vector<1x8x64xf32>
    %43 = tpu.concatenate %37, %38, %39, %40, %41, %42 in 0 : vector<1x8x64xf32>, vector<1x8x64xf32>, vector<1x8x64xf32>, vector<1x8x64xf32>, vector<1x8x64xf32>, vector<1x8x64xf32> -> vector<6x8x64xf32>
    %cst = arith.constant dense<0xFF800000> : vector<6x8xf32>
    %44 = vector.multi_reduction <maximumf>, %43, %cst [2] : vector<6x8x64xf32> to vector<6x8xf32>
    %45 = vector.shape_cast %44 : vector<6x8xf32> to vector<6x8x1xf32>
    %cst_3 = arith.constant dense<0xFF800000> : vector<6x1xf32>
    %46 = vector.multi_reduction <maximumf>, %45, %cst_3 [1] : vector<6x8x1xf32> to vector<6x1xf32>
    %47 = vector.shape_cast %46 : vector<6x1xf32> to vector<6x1x1xf32>
    %48 = vector.broadcast %47 : vector<6x1x1xf32> to vector<6x8x64xf32>
    %49 = arith.subf %43, %48 : vector<6x8x64xf32>
    %50 = math.exp %49 : vector<6x8x64xf32>
    %cst_4 = arith.constant dense<0.000000e+00> : vector<6x64xf32>
    %51 = vector.multi_reduction <add>, %50, %cst_4 [1] : vector<6x8x64xf32> to vector<6x64xf32>
    %52 = vector.shape_cast %51 : vector<6x64xf32> to vector<6x1x64xf32>
    %cst_5 = arith.constant dense<0.000000e+00> : vector<6x8xf32>
    %53 = vector.multi_reduction <add>, %50, %cst_5 [2] : vector<6x8x64xf32> to vector<6x8xf32>
    %54 = vector.shape_cast %53 : vector<6x8xf32> to vector<6x8x1xf32>
    %cst_6 = arith.constant dense<0.000000e+00> : vector<6x1xf32>
    %55 = vector.multi_reduction <add>, %52, %cst_6 [2] : vector<6x1x64xf32> to vector<6x1xf32>
    %56 = vector.shape_cast %55 : vector<6x1xf32> to vector<6x1x1xf32>
    %57 = tpu.iota {dimensions = array<i32: 2>} : vector<1x1x64xi32>
    %c7_i32 = arith.constant 7 : i32
    %58 = vector.broadcast %c7_i32 : i32 to vector<1x1x64xi32>
    %59 = arith.andi %57, %58 : vector<1x1x64xi32>
    %c1_i32 = arith.constant 1 : i32
    %60 = vector.broadcast %c1_i32 : i32 to vector<1x1x64xi32>
    %61 = arith.addi %59, %60 : vector<1x1x64xi32>
    %62 = arith.sitofp %61 : vector<1x1x64xi32> to vector<1x1x64xf32>
    %c3_i32 = arith.constant 3 : i32
    %63 = vector.broadcast %c3_i32 : i32 to vector<1x1x64xi32>
    %64 = arith.shrsi %57, %63 : vector<1x1x64xi32>
    %c1_i32_7 = arith.constant 1 : i32
    %65 = vector.broadcast %c1_i32_7 : i32 to vector<1x1x64xi32>
    %66 = arith.addi %64, %65 : vector<1x1x64xi32>
    %67 = arith.sitofp %66 : vector<1x1x64xi32> to vector<1x1x64xf32>
    %68 = tpu.iota {dimensions = array<i32: 1>} : vector<1x8x1xi32>
    %c1_i32_8 = arith.constant 1 : i32
    %69 = vector.broadcast %c1_i32_8 : i32 to vector<1x8x1xi32>
    %70 = arith.addi %68, %69 : vector<1x8x1xi32>
    %71 = arith.sitofp %70 : vector<1x8x1xi32> to vector<1x8x1xf32>
    %72 = vector.broadcast %62 : vector<1x1x64xf32> to vector<6x1x64xf32>
    %73 = arith.mulf %52, %72 : vector<6x1x64xf32>
    %cst_9 = arith.constant dense<0.000000e+00> : vector<6x1xf32>
    %74 = vector.multi_reduction <add>, %73, %cst_9 [2] : vector<6x1x64xf32> to vector<6x1xf32>
    %75 = vector.shape_cast %74 : vector<6x1xf32> to vector<6x1x1xf32>
    %76 = vector.broadcast %67 : vector<1x1x64xf32> to vector<6x1x64xf32>
    %77 = arith.mulf %52, %76 : vector<6x1x64xf32>
    %cst_10 = arith.constant dense<0.000000e+00> : vector<6x1xf32>
    %78 = vector.multi_reduction <add>, %77, %cst_10 [2] : vector<6x1x64xf32> to vector<6x1xf32>
    %79 = vector.shape_cast %78 : vector<6x1xf32> to vector<6x1x1xf32>
    %80 = vector.broadcast %71 : vector<1x8x1xf32> to vector<6x8x1xf32>
    %81 = arith.mulf %54, %80 : vector<6x8x1xf32>
    %cst_11 = arith.constant dense<0.000000e+00> : vector<6x1xf32>
    %82 = vector.multi_reduction <add>, %81, %cst_11 [1] : vector<6x8x1xf32> to vector<6x1xf32>
    %83 = vector.shape_cast %82 : vector<6x1xf32> to vector<6x1x1xf32>
    %84 = tpu.reciprocal %56 : vector<6x1x1xf32> -> vector<6x1x1xf32>
    %85 = tpu.concatenate %75, %79, %83 in 2 : vector<6x1x1xf32>, vector<6x1x1xf32>, vector<6x1x1xf32> -> vector<6x1x3xf32>
    %86 = vector.broadcast %84 : vector<6x1x1xf32> to vector<6x1x3xf32>
    %87 = arith.mulf %85, %86 : vector<6x1x3xf32>
    %cst_12 = arith.constant 1.000000e+00 : f32
    %88 = vector.broadcast %cst_12 : f32 to vector<6x1x3xf32>
    %89 = arith.subf %87, %88 : vector<6x1x3xf32>
    %c0_13 = arith.constant 0 : index
    %c0_14 = arith.constant 0 : index
    %c0_15 = arith.constant 0 : index
    %90 = vector.load %arg3[%c0_13, %c0_14, %c0_15] : memref<6x1x3xf32, #tpu.memory_space<vmem>>, vector<6x1x3xf32>
    tpu.vector_store %arg3[%c0_13, %c0_14, %c0_15], %89 {strides = array<i32>} : memref<6x1x3xf32, #tpu.memory_space<vmem>>, vector<6x1x3xf32>,
    return
  }
  func.func @transform_0(%arg0: i32) -> (i32, i32) {
    %c0_i32 = arith.constant 0 : i32
    %c0_i32_0 = arith.constant 0 : i32
    %c0_i32_1 = arith.constant 0 : i32
    return %c0_i32, %c0_i32_0 : i32, i32
  }
  func.func @transform_1(%arg0: i32) -> (i32, i32) {
    %c0_i32 = arith.constant 0 : i32
    %c0_i32_0 = arith.constant 0 : i32
    %c0_i32_1 = arith.constant 0 : i32
    return %c0_i32, %c0_i32_0 : i32, i32
  }
  func.func @transform_2(%arg0: i32) -> (i32, i32, i32) {
    %c0_i32 = arith.constant 0 : i32
    %c0_i32_0 = arith.constant 0 : i32
    %c0_i32_1 = arith.constant 0 : i32
    %c0_i32_2 = arith.constant 0 : i32
    return %c0_i32, %c0_i32_0, %c0_i32_1 : i32, i32, i32
  }
}

</mosaic_0001>

<bundles_post_ra>
// kernel: custom_net_forward.1
= control target key start
LH: loop header
LB: loop body
LE: loop exit
PB: predicated region body
PF: predicated region fallthrough
CT: control target
= control target key end

     0   :  { %v473_v0 = vmov 0   ;;  %v474_v4 = vmov 1   ;;  %v475_v5 = vmov 2   ;;  %v476_v6 = vmov 3   ;;  %s628_s1 = inlined_call_operand.vmem [shape: f32[24,5], index: 1, kind: input, shape index: {}]   ;;  %s629_s0 = inlined_call_operand.vmem [shape: f32[5,128], index: 0, kind: input, shape index: {}]   ;;  %s630_s2 = inlined_call_operand.vmem [shape: f32[6,1,3], index: 2, kind: output, shape index: {}]  }
   0x1   :  { %440 = vset.pattern.permute.xlu1 %v473_v0  ;;  %439 = vset.pattern.permute.xlu0 %v473_v0  ;;  %v14_v1 = vld [vmem:[%s628_s1 + $0x10] sm:$0xff]  ;;  %v12_v2 = vld [vmem:[%s628_s1] sm:$0xff]  ;;  %v13_v3 = vld [vmem:[%s628_s1 + $0x8] sm:$0xff]  ;;  %v477_v7 = vmov 4   ;;  %v30_v8 = vlaneseq  ;;  %vm137_vm0 = vcmask 523264   ;;  %vm390_vm1 = vcmask 7168  }
   0x2   :  { %27 = vperm.xlu1 %440, %v14_v1   ;;  %17 = vperm.xlu0 %439, %v12_v2   ;;  %v11_v16 = vld [vmem:[%s629_s0] sm:$0x1f]  ;;  %s478_s0 = smov 64   ;;  %vm397_vm2 = vcmask 15360   ;;  %vm416_vm3 = vcmask 16384  }
   0x3   :  { %v504_v11 = vshrl.u32 %v30_v8, 7 }
   0x5   :  { %v32_v14 = vsub.s32 0, %v504_v11  ;;  %v51_v15 = vsub.s32 1, %v504_v11  ;;  %v73_v21 = vsub.s32 2, %v504_v11  ;;  %v95_v24 = vsub.s32 3, %v504_v11 }
   0x6   :  { %441 = vset.pattern.permute.xlu1 %v474_v4  ;;  %22 = vperm.xlu0 %439, %v13_v3   ;;  %v117_v31 = vsub.s32 4, %v504_v11 }
   0x7   :  { %38 = vperm.xlu1 %441, %v12_v2   ;;  %v33_v19 = vrot.slane %v11_v16, %v32_v14  ;;  %v52_v20 = vrot.slane %v11_v16, %v51_v15  ;;  %v74_v27 = vrot.slane %v11_v16, %v73_v21  ;;  %v96_v30 = vrot.slane %v11_v16, %v95_v24 }
   0x8   :  { %v118_v36 = vrot.slane %v11_v16, %v117_v31 }
   0xa   :  { %442 = vset.pattern.permute.xlu0 %v474_v4 }
   0xb   :  { %46 = vperm.xlu1 %441, %v14_v1   ;;  %42 = vperm.xlu0 %442, %v13_v3  }
   0xf   :  { %443 = vset.pattern.permute.xlu1 %v475_v5  ;;  %444 = vset.pattern.permute.xlu0 %v475_v5 }
  0x10   :  { %60 = vperm.xlu1 %443, %v12_v2   ;;  %64 = vperm.xlu0 %444, %v13_v3  }
  0x14   :  { %68 = vperm.xlu1 %443, %v14_v1   ;;  %446 = vset.pattern.permute.xlu0 %v476_v6 }
  0x15   :  { %86 = vperm.xlu0 %446, %v13_v3  }
  0x18   :  { %445 = vset.pattern.permute.xlu1 %v476_v6 }
  0x19   :  { %82 = vperm.xlu1 %445, %v12_v2   ;;  %448 = vset.pattern.permute.xlu0 %v477_v7 }
  0x1a   :  { %108 = vperm.xlu0 %448, %v13_v3  }
  0x1d   :  { %90 = vperm.xlu1 %445, %v14_v1  }
  0x21   :  { %447 = vset.pattern.permute.xlu1 %v477_v7 }
  0x22   :  { %104 = vperm.xlu1 %447, %v12_v2  }
  0x26   :  { %112 = vperm.xlu1 %447, %v14_v1  }
  0x81   :  { %v28_v9 = vpop.permute.xlu1 %27  ;;  %v18_v10 = vpop.permute.xlu0 %17 }
  0x82   :  { %v34_v39 = vmul.f32 %v33_v19, %v18_v10  ;;  %v36_v49 = vmul.f32 %v33_v19, %v28_v9 }
  0x85   :  { %v23_v12 = vpop.permute.xlu0 %22 }
  0x86   :  { %v39_v13 = vpop.permute.xlu1 %38  ;;  %v35_v22 = vmul.f32 %v33_v19, %v23_v12 }
  0x87   :  { %v53_v40 = vmul.f32 %v52_v20, %v39_v13 }
  0x89   :  { %v56_v46 = vadd.f32 %v53_v40, %v34_v39 }
  0x8a   :  { %v47_v17 = vpop.permute.xlu1 %46  ;;  %v43_v18 = vpop.permute.xlu0 %42 }
  0x8b   :  { %v54_v23 = vmul.f32 %v52_v20, %v43_v18  ;;  %v55_v47 = vmul.f32 %v52_v20, %v47_v17 }
  0x8d   :  { %v57_v28 = vadd.f32 %v54_v23, %v35_v22  ;;  %v58_v53 = vadd.f32 %v55_v47, %v36_v49 }
  0x8f   :  { %v61_v25 = vpop.permute.xlu1 %60  ;;  %v65_v26 = vpop.permute.xlu0 %64 }
  0x90   :  { %v76_v29 = vmul.f32 %v74_v27, %v65_v26  ;;  %v75_v43 = vmul.f32 %v74_v27, %v61_v25 }
  0x92   :  { %v79_v34 = vadd.f32 %v76_v29, %v57_v28  ;;  %v78_v50 = vadd.f32 %v75_v43, %v56_v46 }
  0x93   :  { %v69_v32 = vpop.permute.xlu1 %68 }
  0x94   :  { %v87_v33 = vpop.permute.xlu0 %86  ;;  %v77_v51 = vmul.f32 %v74_v27, %v69_v32 }
  0x95   :  { %v98_v35 = vmul.f32 %v96_v30, %v87_v33 }
  0x96   :  { %v80_v57 = vadd.f32 %v77_v51, %v58_v53 }
  0x97   :  { %v101_v41 = vadd.f32 %v98_v35, %v79_v34 }
  0x98   :  { %v83_v37 = vpop.permute.xlu1 %82 }
  0x99   :  { %v109_v38 = vpop.permute.xlu0 %108  ;;  %v97_v48 = vmul.f32 %v96_v30, %v83_v37 }
  0x9a   :  { %v120_v42 = vmul.f32 %v118_v36, %v109_v38  ;;  %v283_v38 = vand.u32 127, %v30_v8 }
  0x9b   :  { %v100_v54 = vadd.f32 %v97_v48, %v78_v50 }
  0x9c   :  { %v514_v44 = vadd.f32 %v120_v42, %v101_v41  ;;  %v91_v45 = vpop.permute.xlu1 %90  ;;  %v284_v47 = vand.u32 7, %v283_v38 }
  0x9d   :  { %v99_v55 = vmul.f32 %v96_v30, %v91_v45 }
  0x9e   :  { %130 = vrot.lane.b32.xlu0 %v514_v44, %s478_s0  ;;  %v141_v1 = vsel %vm137_vm0, %v514_v44, -inf }
  0x9f   :  { %v102_v60 = vadd.f32 %v99_v55, %v80_v57 }
  0xa1   :  { %v105_v52 = vpop.permute.xlu1 %104 }
  0xa2   :  { %v119_v56 = vmul.f32 %v118_v36, %v105_v52  ;;  %v285_v52 = vadd.s32 1, %v284_v47 }
  0xa4   :  { %v122_v58 = vadd.f32 %v119_v56, %v100_v54  ;;  %v538_v55 = vcvt.s32.f32 %v285_v52  ;;  %v287_v56 = vshra.s32 %v283_v38, 3 }
  0xa5   :  { %v113_v59 = vpop.permute.xlu1 %112 }
  0xa6   :  { %v121_v61 = vmul.f32 %v118_v36, %v113_v59  ;;  %126 = vrot.lane.b32.xlu1 %v122_v58, %s478_s0  ;;  %v138_v63 = vsel %vm137_vm0, %v122_v58, -inf }
  0xa8   :  { %v124_v62 = vadd.f32 %v121_v61, %v102_v60 }
  0xaa   :  { %134 = vrot.lane.b32.xlu1 %v124_v62, %s478_s0  ;;  %v144_v0 = vsel %vm137_vm0, %v124_v62, -inf }
  0xbd   :  { %139 = vmax.xlane.f32.xlu0 %v138_v63 }
  0xc1   :  { %145 = vmax.xlane.f32.xlu0 %v144_v0 }
  0xce   :  { %142 = vmax.xlane.f32.xlu1 %v141_v1 }
 0x110   :  { %v521_v2 = vpop.permute.xlu0 %130 }
 0x111   :  { %v150_v3 = vsel %vm137_vm0, %v521_v2, -inf }
 0x112   :  { %151 = vmax.xlane.f32.xlu1 %v150_v3 }
 0x118   :  { %v525_v4 = vpop.permute.xlu1 %126 }
 0x119   :  { %v147_v5 = vsel %vm137_vm0, %v525_v4, -inf }
 0x11a   :  { %148 = vmax.xlane.f32.xlu0 %v147_v5 }
 0x11c   :  { %v529_v6 = vpop.permute.xlu1 %134 }
 0x11d   :  { %v153_v7 = vsel %vm137_vm0, %v529_v6, -inf }
 0x11e   :  { %154 = vmax.xlane.f32.xlu0 %v153_v7 }
 0x14a   :  { %v140_v9 = vpop.xlane.xlu0 %139 }
 0x14b   :  { %v156_v10 = vrot.slane %v140_v9, 4 }
 0x14d   :  { %v157_v12 = vmax.f32 %v140_v9, %v156_v10 }
 0x14e   :  { %v146_v13 = vpop.xlane.xlu0 %145 }
 0x14f   :  { %v158_v14 = vrot.slane %v157_v12, 2  ;;  %v168_v15 = vrot.slane %v146_v13, 4 }
 0x151   :  { %v159_v16 = vmax.f32 %v157_v12, %v158_v14  ;;  %v169_v17 = vmax.f32 %v146_v13, %v168_v15 }
 0x153   :  { %v160_v18 = vrot.slane %v159_v16, 1  ;;  %v170_v19 = vrot.slane %v169_v17, 2 }
 0x155   :  { %v161_v20 = vmax.f32 %v159_v16, %v160_v18  ;;  %v171_v21 = vmax.f32 %v169_v17, %v170_v19 }
 0x157   :  { %v192_v22 = vsub.f32 %v122_v58, %v161_v20  ;;  %v172_v23 = vrot.slane %v171_v21, 1 }
 0x159   :  { %v198_v24 = vmul.f32 1.442695, %v192_v22  ;;  %v173_v25 = vmax.f32 %v171_v21, %v172_v23 }
 0x15b   :  { %449 = vpow2.f32 %v198_v24  ;;  %v194_v26 = vsub.f32 %v124_v62, %v173_v25  ;;  %v143_v27 = vpop.xlane.xlu1 %142  ;;  %v288_v62 = vadd.s32 1, %v287_v56 }
 0x15c   :  { %v162_v28 = vrot.slane %v143_v27, 4 }
 0x15d   :  { %v202_v29 = vmul.f32 1.442695, %v194_v26  ;;  %v549_v5 = vcvt.s32.f32 %v288_v62 }
 0x15e   :  { %v163_v30 = vmax.f32 %v143_v27, %v162_v28 }
 0x15f   :  { %451 = vpow2.f32 %v202_v29 }
 0x160   :  { %v164_v31 = vrot.slane %v163_v30, 2 }
 0x162   :  { %v165_v32 = vmax.f32 %v163_v30, %v164_v31 }
 0x164   :  { %v166_v33 = vrot.slane %v165_v32, 1 }
 0x165   :  { %v450_v34 = vpop.eup %449 }
 0x166   :  { %v167_v35 = vmax.f32 %v165_v32, %v166_v33  ;;  %v210_v36 = vsel %vm137_vm0, %v450_v34, 0.0 }
 0x167   :  { %252 = vadd.xlane.f32.xlu1 %v210_v36  ;;  %v211_v37 = vrot.slane %v210_v36, 4 }
 0x168   :  { %v193_v39 = vsub.f32 %v514_v44, %v167_v35 }
 0x169   :  { %v452_v40 = vpop.eup %451  ;;  %v212_v41 = vadd.f32 %v211_v37, %v210_v36 }
 0x16a   :  { %v200_v42 = vmul.f32 1.442695, %v193_v39  ;;  %v224_v43 = vsel %vm137_vm0, %v452_v40, 0.0 }
 0x16b   :  { %v213_v45 = vrot.slane %v212_v41, 2  ;;  %256 = vadd.xlane.f32.xlu1 %v224_v43  ;;  %v225_v46 = vrot.slane %v224_v43, 4 }
 0x16c   :  { %453 = vpow2.f32 %v200_v42 }
 0x16d   :  { %v214_v48 = vadd.f32 %v213_v45, %v212_v41  ;;  %v226_v49 = vadd.f32 %v225_v46, %v224_v43 }
 0x16f   :  { %v227_v50 = vrot.slane %v226_v49, 2  ;;  %v215_v51 = vrot.slane %v214_v48, 1 }
 0x171   :  { %v228_v53 = vadd.f32 %v227_v50, %v226_v49  ;;  %v216_v54 = vadd.f32 %v215_v51, %v214_v48 }
 0x173   :  { %v264_v8 = vsel %vm137_vm0, %v216_v54, 0.0  ;;  %v229_v44 = vrot.slane %v228_v53, 1  ;;  %v294_v61 = vmul.f32 %v538_v55, %v216_v54  ;;  %v318_v12 = vmul.f32 %v549_v5, %v216_v54 }
 0x174   :  { %265 = vadd.xlane.f32.xlu1 %v264_v8 }
 0x175   :  { %v540_v57 = vadd.f32 %v229_v44, %v228_v53  ;;  %v300_v1 = vsel %vm137_vm0, %v294_v61, 0.0  ;;  %v324_v15 = vsel %vm137_vm0, %v318_v12, 0.0 }
 0x176   :  { %v454_v58 = vpop.eup %453 }
 0x177   :  { %v217_v59 = vsel %vm137_vm0, %v454_v58, 0.0  ;;  %v270_v60 = vsel %vm137_vm0, %v540_v57, 0.0  ;;  %v296_v3 = vmul.f32 %v538_v55, %v540_v57 }
 0x178   :  { %v218_v63 = vrot.slane %v217_v59, 4  ;;  %254 = vadd.xlane.f32.xlu0 %v217_v59  ;;  %271 = vadd.xlane.f32.xlu1 %v270_v60 }
 0x179   :  { %v306_v10 = vsel %vm137_vm0, %v296_v3, 0.0 }
 0x17a   :  { %v219_v0 = vadd.f32 %v218_v63, %v217_v59  ;;  %v320_v63 = vmul.f32 %v549_v5, %v540_v57 }
 0x17c   :  { %v220_v7 = vrot.slane %v219_v0, 2  ;;  %301 = vadd.xlane.f32.xlu1 %v300_v1 }
 0x17e   :  { %v221_v9 = vadd.f32 %v220_v7, %v219_v0  ;;  %v330_v7 = vsel %vm137_vm0, %v320_v63, 0.0 }
 0x180   :  { %307 = vadd.xlane.f32.xlu1 %v306_v10  ;;  %v222_v13 = vrot.slane %v221_v9, 1 }
 0x182   :  { %v223_v14 = vadd.f32 %v222_v13, %v221_v9 }
 0x184   :  { %325 = vadd.xlane.f32.xlu1 %v324_v15  ;;  %v267_v16 = vsel %vm137_vm0, %v223_v14, 0.0  ;;  %v295_v17 = vmul.f32 %v538_v55, %v223_v14  ;;  %v319_v19 = vmul.f32 %v549_v5, %v223_v14 }
 0x185   :  { %268 = vadd.xlane.f32.xlu0 %v267_v16 }
 0x186   :  { %v303_v18 = vsel %vm137_vm0, %v295_v17, 0.0  ;;  %v327_v20 = vsel %vm137_vm0, %v319_v19, 0.0 }
 0x189   :  { %304 = vadd.xlane.f32.xlu0 %v303_v18 }
 0x18d   :  { %328 = vadd.xlane.f32.xlu0 %v327_v20 }
 0x19f   :  { %v152_v21 = vpop.xlane.xlu1 %151 }
 0x1a0   :  { %v180_v22 = vrot.slane %v152_v21, 4 }
 0x1a2   :  { %v181_v23 = vmax.f32 %v152_v21, %v180_v22 }
 0x1a4   :  { %v182_v24 = vrot.slane %v181_v23, 2 }
 0x1a6   :  { %v183_v25 = vmax.f32 %v181_v23, %v182_v24 }
 0x1a7   :  { %v149_v26 = vpop.xlane.xlu0 %148 }
 0x1a8   :  { %v184_v27 = vrot.slane %v183_v25, 1  ;;  %v174_v28 = vrot.slane %v149_v26, 4 }
 0x1aa   :  { %v185_v29 = vmax.f32 %v183_v25, %v184_v27  ;;  %v175_v30 = vmax.f32 %v149_v26, %v174_v28  ;;  %v292_v28 = vadd.s32 1, %v504_v11 }
 0x1ab   :  { %v155_v31 = vpop.xlane.xlu0 %154 }
 0x1ac   :  { %v196_v32 = vsub.f32 %v521_v2, %v185_v29  ;;  %v176_v33 = vrot.slane %v175_v30, 2  ;;  %v186_v34 = vrot.slane %v155_v31, 4  ;;  %v584_v29 = vcvt.s32.f32 %v292_v28 }
 0x1ae   :  { %v206_v35 = vmul.f32 1.442695, %v196_v32  ;;  %v177_v36 = vmax.f32 %v175_v30, %v176_v33  ;;  %v187_v37 = vmax.f32 %v155_v31, %v186_v34 }
 0x1b0   :  { %455 = vpow2.f32 %v206_v35  ;;  %v178_v38 = vrot.slane %v177_v36, 1  ;;  %v188_v39 = vrot.slane %v187_v37, 2 }
 0x1b2   :  { %v179_v40 = vmax.f32 %v177_v36, %v178_v38  ;;  %v189_v41 = vmax.f32 %v187_v37, %v188_v39 }
 0x1b4   :  { %v195_v42 = vsub.f32 %v525_v4, %v179_v40  ;;  %v190_v43 = vrot.slane %v189_v41, 1 }
 0x1b6   :  { %v204_v45 = vmul.f32 1.442695, %v195_v42  ;;  %v191_v46 = vmax.f32 %v189_v41, %v190_v43 }
 0x1b8   :  { %457 = vpow2.f32 %v204_v45  ;;  %v197_v47 = vsub.f32 %v529_v6, %v191_v46 }
 0x1ba   :  { %v456_v48 = vpop.eup %455  ;;  %v208_v2 = vmul.f32 1.442695, %v197_v47 }
 0x1bb   :  { %v238_v49 = vsel %vm137_vm0, %v456_v48, 0.0 }
 0x1bc   :  { %459 = vpow2.f32 %v208_v2  ;;  %v239_v50 = vrot.slane %v238_v49, 4  ;;  %260 = vadd.xlane.f32.xlu1 %v238_v49 }
 0x1be   :  { %v240_v51 = vadd.f32 %v239_v50, %v238_v49 }
 0x1c0   :  { %v241_v52 = vrot.slane %v240_v51, 2 }
 0x1c2   :  { %v458_v53 = vpop.eup %457  ;;  %v242_v54 = vadd.f32 %v241_v52, %v240_v51 }
 0x1c3   :  { %v231_v8 = vsel %vm137_vm0, %v458_v53, 0.0 }
 0x1c4   :  { %258 = vadd.xlane.f32.xlu0 %v231_v8  ;;  %v232_v4 = vrot.slane %v231_v8, 4  ;;  %v243_v44 = vrot.slane %v242_v54, 1 }
 0x1c6   :  { %v460_v56 = vpop.eup %459  ;;  %v233_v58 = vadd.f32 %v232_v4, %v231_v8  ;;  %v244_v59 = vadd.f32 %v243_v44, %v242_v54 }
 0x1c7   :  { %v245_v6 = vsel %vm137_vm0, %v460_v56, 0.0 }
 0x1c8   :  { %v234_v60 = vrot.slane %v233_v58, 2  ;;  %262 = vadd.xlane.f32.xlu0 %v245_v6  ;;  %v246_v61 = vrot.slane %v245_v6, 4  ;;  %v276_v62 = vsel %vm137_vm0, %v244_v59, 0.0  ;;  %v298_v9 = vmul.f32 %v538_v55, %v244_v59 }
 0x1c9   :  { %277 = vadd.xlane.f32.xlu1 %v276_v62  ;;  %v322_v16 = vmul.f32 %v549_v5, %v244_v59 }
 0x1ca   :  { %v235_v0 = vadd.f32 %v234_v60, %v233_v58  ;;  %v247_v1 = vadd.f32 %v246_v61, %v245_v6  ;;  %v312_v14 = vsel %vm137_vm0, %v298_v9, 0.0 }
 0x1cb   :  { %v336_v18 = vsel %vm137_vm0, %v322_v16, 0.0 }
 0x1cc   :  { %v248_v3 = vrot.slane %v247_v1, 2  ;;  %v236_v10 = vrot.slane %v235_v0, 1 }
 0x1cd   :  { %331 = vadd.xlane.f32.xlu1 %v330_v7 }
 0x1ce   :  { %v249_v12 = vadd.f32 %v248_v3, %v247_v1  ;;  %v237_v13 = vadd.f32 %v236_v10, %v235_v0 }
 0x1d0   :  { %v273_v15 = vsel %vm137_vm0, %v237_v13, 0.0  ;;  %v250_v17 = vrot.slane %v249_v12, 1  ;;  %v297_v20 = vmul.f32 %v538_v55, %v237_v13  ;;  %v321_v24 = vmul.f32 %v549_v5, %v237_v13 }
 0x1d1   :  { %313 = vadd.xlane.f32.xlu1 %v312_v14  ;;  %274 = vadd.xlane.f32.xlu0 %v273_v15 }
 0x1d2   :  { %v251_v57 = vadd.f32 %v250_v17, %v249_v12  ;;  %v309_v21 = vsel %vm137_vm0, %v297_v20, 0.0  ;;  %v333_v25 = vsel %vm137_vm0, %v321_v24, 0.0 }
 0x1d4   :  { %v279_v19 = vsel %vm137_vm0, %v251_v57, 0.0  ;;  %v299_v22 = vmul.f32 %v538_v55, %v251_v57  ;;  %v323_v26 = vmul.f32 %v549_v5, %v251_v57 }
 0x1d5   :  { %337 = vadd.xlane.f32.xlu1 %v336_v18  ;;  %280 = vadd.xlane.f32.xlu0 %v279_v19 }
 0x1d6   :  { %v315_v23 = vsel %vm137_vm0, %v299_v22, 0.0  ;;  %v339_v27 = vsel %vm137_vm0, %v323_v26, 0.0 }
 0x1d9   :  { %310 = vadd.xlane.f32.xlu0 %v309_v21 }
 0x1dd   :  { %316 = vadd.xlane.f32.xlu0 %v315_v23 }
 0x1e1   :  { %334 = vadd.xlane.f32.xlu0 %v333_v25 }
 0x1e5   :  { %340 = vadd.xlane.f32.xlu0 %v339_v27 }
 0x1f4   :  { %v253_v30 = vpop.xlane.xlu1 %252 }
 0x1f5   :  { %v342_v55 = vmul.f32 %v584_v29, %v253_v30 }
 0x1f7   :  { %v348_v31 = vrot.slane %v342_v55, 4 }
 0x1f8   :  { %v257_v32 = vpop.xlane.xlu1 %256 }
 0x1f9   :  { %v349_v33 = vadd.f32 %v348_v31, %v342_v55  ;;  %v344_v60 = vmul.f32 %v584_v29, %v257_v32 }
 0x1fb   :  { %v350_v35 = vrot.slane %v349_v33, 2  ;;  %v360_v61 = vrot.slane %v344_v60, 4 }
 0x1fd   :  { %v351_v39 = vadd.f32 %v350_v35, %v349_v33  ;;  %v361_v62 = vadd.f32 %v360_v61, %v344_v60 }
 0x1ff   :  { %v352_v11 = vrot.slane %v351_v39, 1  ;;  %v362_v1 = vrot.slane %v361_v62, 2 }
 0x201   :  { %v266_v34 = vpop.xlane.xlu1 %265  ;;  %v353_v45 = vadd.f32 %v352_v11, %v351_v39  ;;  %v363_v7 = vadd.f32 %v362_v1, %v361_v62 }
 0x202   :  { %461 = vrcp.f32 %v266_v34 }
 0x203   :  { %v364_v12 = vrot.slane %v363_v7, 1 }
 0x205   :  { %v272_v36 = vpop.xlane.xlu1 %271  ;;  %v255_v37 = vpop.xlane.xlu0 %254  ;;  %v365_v17 = vadd.f32 %v364_v12, %v363_v7 }
 0x206   :  { %v343_v5 = vmul.f32 %v584_v29, %v255_v37 }
 0x208   :  { %v354_v38 = vrot.slane %v343_v5, 4 }
 0x209   :  { %v302_v40 = vpop.xlane.xlu1 %301 }
 0x20a   :  { %v355_v41 = vadd.f32 %v354_v38, %v343_v5 }
 0x20c   :  { %v356_v43 = vrot.slane %v355_v41, 2  ;;  %v462_v49 = vpop.eup %461 }
 0x20d   :  { %v308_v42 = vpop.xlane.xlu1 %307 }
 0x20e   :  { %v357_v47 = vadd.f32 %v356_v43, %v355_v41 }
 0x210   :  { %v358_v52 = vrot.slane %v357_v47, 1 }
 0x211   :  { %v326_v46 = vpop.xlane.xlu1 %325 }
 0x212   :  { %v391_v48 = vsel %vm390_vm1, %v302_v40, %v326_v46  ;;  %v269_v2 = vpop.xlane.xlu0 %268  ;;  %v359_v8 = vadd.f32 %v358_v52, %v357_v47 }
 0x213   :  { %v398_v50 = vsel %vm397_vm2, %v391_v48, %v353_v45  ;;  %463 = vrcp.f32 %v269_v2 }
 0x214   :  { %v404_v51 = vmul.f32 %v462_v49, %v398_v50  ;;  %465 = vrcp.f32 %v272_v36 }
 0x216   :  { %v427_v53 = vadd.f32 -1.0, %v404_v51  ;;  %v305_v54 = vpop.xlane.xlu0 %304 }
 0x218   :  { %417 = vst.msk [vmem:[%s630_s2] sm:$0x1] %vm416_vm3, %v427_v53 }
 0x21a   :  { %v329_v4 = vpop.xlane.xlu0 %328 }
 0x21b   :  { %v392_v44 = vsel %vm390_vm1, %v305_v54, %v329_v4 }
 0x21c   :  { %v399_v56 = vsel %vm397_vm2, %v392_v44, %v359_v8 }
 0x21d   :  { %v464_v58 = vpop.eup %463 }
 0x21e   :  { %v405_v59 = vmul.f32 %v464_v58, %v399_v56  ;;  %v466_v22 = vpop.eup %465 }
 0x220   :  { %v428_v6 = vadd.f32 -1.0, %v405_v59 }
 0x222   :  { %418 = vst.msk [vmem:[%s630_s2 + $0x1] sm:$0x1] %vm416_vm3, %v428_v6 }
 0x249   :  { %v261_v63 = vpop.xlane.xlu1 %260 }
 0x24a   :  { %v346_v0 = vmul.f32 %v584_v29, %v261_v63 }
 0x24c   :  { %v372_v3 = vrot.slane %v346_v0, 4 }
 0x24e   :  { %v373_v10 = vadd.f32 %v372_v3, %v346_v0 }
 0x250   :  { %v374_v13 = vrot.slane %v373_v10, 2 }
 0x251   :  { %v259_v9 = vpop.xlane.xlu0 %258 }
 0x252   :  { %v345_v14 = vmul.f32 %v584_v29, %v259_v9  ;;  %v375_v57 = vadd.f32 %v374_v13, %v373_v10 }
 0x254   :  { %v366_v18 = vrot.slane %v345_v14, 4  ;;  %v376_v25 = vrot.slane %v375_v57, 1 }
 0x255   :  { %v263_v16 = vpop.xlane.xlu0 %262 }
 0x256   :  { %v278_v15 = vpop.xlane.xlu1 %277  ;;  %v347_v19 = vmul.f32 %v584_v29, %v263_v16  ;;  %v367_v26 = vadd.f32 %v366_v18, %v345_v14  ;;  %v377_v29 = vadd.f32 %v376_v25, %v375_v57 }
 0x257   :  { %467 = vrcp.f32 %v278_v15 }
 0x258   :  { %v378_v27 = vrot.slane %v347_v19, 4  ;;  %v368_v31 = vrot.slane %v367_v26, 2 }
 0x25a   :  { %v332_v20 = vpop.xlane.xlu1 %331  ;;  %v379_v32 = vadd.f32 %v378_v27, %v347_v19  ;;  %v369_v38 = vadd.f32 %v368_v31, %v367_v26 }
 0x25b   :  { %v393_v21 = vsel %vm390_vm1, %v308_v42, %v332_v20 }
 0x25c   :  { %v400_v23 = vsel %vm397_vm2, %v393_v21, %v365_v17  ;;  %v380_v39 = vrot.slane %v379_v32, 2  ;;  %v370_v11 = vrot.slane %v369_v38, 1 }
 0x25d   :  { %v406_v24 = vmul.f32 %v466_v22, %v400_v23 }
 0x25e   :  { %v314_v28 = vpop.xlane.xlu1 %313  ;;  %v275_v30 = vpop.xlane.xlu0 %274  ;;  %v381_v42 = vadd.f32 %v380_v39, %v379_v32  ;;  %v371_v45 = vadd.f32 %v370_v11, %v369_v38 }
 0x25f   :  { %v429_v55 = vadd.f32 -1.0, %v406_v24  ;;  %469 = vrcp.f32 %v275_v30 }
 0x260   :  { %v382_v46 = vrot.slane %v381_v42, 1 }
 0x261   :  { %419 = vst.msk [vmem:[%s630_s2 + $0x2] sm:$0x1] %vm416_vm3, %v429_v55  ;;  %v468_v36 = vpop.eup %467 }
 0x262   :  { %v338_v33 = vpop.xlane.xlu1 %337  ;;  %v281_v34 = vpop.xlane.xlu0 %280  ;;  %v383_v51 = vadd.f32 %v382_v46, %v381_v42 }
 0x263   :  { %v395_v35 = vsel %vm390_vm1, %v314_v28, %v338_v33  ;;  %471 = vrcp.f32 %v281_v34 }
 0x264   :  { %v402_v37 = vsel %vm397_vm2, %v395_v35, %v377_v29 }
 0x265   :  { %v408_v5 = vmul.f32 %v468_v36, %v402_v37 }
 0x266   :  { %v311_v40 = vpop.xlane.xlu0 %310 }
 0x267   :  { %v431_v41 = vadd.f32 -1.0, %v408_v5 }
 0x269   :  { %421 = vst.msk [vmem:[%s630_s2 + $0x4] sm:$0x1] %vm416_vm3, %v431_v41  ;;  %v470_v2 = vpop.eup %469 }
 0x26a   :  { %v317_v43 = vpop.xlane.xlu0 %316 }
 0x26d   :  { %v472_v8 = vpop.eup %471 }
 0x26e   :  { %v335_v47 = vpop.xlane.xlu0 %334 }
 0x26f   :  { %v394_v48 = vsel %vm390_vm1, %v311_v40, %v335_v47 }
 0x270   :  { %v401_v49 = vsel %vm397_vm2, %v394_v48, %v371_v45 }
 0x271   :  { %v407_v50 = vmul.f32 %v470_v2, %v401_v49 }
 0x272   :  { %v341_v52 = vpop.xlane.xlu0 %340 }
 0x273   :  { %v430_v53 = vadd.f32 -1.0, %v407_v50  ;;  %v396_v54 = vsel %vm390_vm1, %v317_v43, %v341_v52 }
 0x274   :  { %v403_v4 = vsel %vm397_vm2, %v396_v54, %v383_v51 }
 0x275   :  { %420 = vst.msk [vmem:[%s630_s2 + $0x3] sm:$0x1] %vm416_vm3, %v430_v53  ;;  %v409_v44 = vmul.f32 %v472_v8, %v403_v4 }
 0x277   :  { %v432_v56 = vadd.f32 -1.0, %v409_v44 }
 0x279   :  { %422 = vst.msk [vmem:[%s630_s2 + $0x5] sm:$0x1] %vm416_vm3, %v432_v56 }

</bundles_post_ra>
